<compile_context>
chip_gen: v7x
topology: tpu7x:2x2x1
jax: 0.10.0
libtpu: 0.0.40
codegen_flags: <defaults>
</compile_context>

<pallas_src>
import functools
import math

import jax
import jax.numpy as jnp
import numpy as np
from jax.experimental import pallas as pl
from jax.experimental.pallas import tpu as pltpu


def _feature_hard_softmax_kernel(x_ref, gid_ref, same_ref, lower_ref, o_ref,
                                 *, inv_tau, shifts, lane):
    """One (TB, L) tile. gid: (1, L) group id per lane (-1 = passthrough column).

    same_ref : (L, L) f32, 1 where columns share a group.
    lower_ref: (L, L) f32, strictly-lower-triangular restriction of `same`.
    """
    x = x_ref[...]                              # (TB, L) f32
    gid = gid_ref[...]                          # (1, L) int32
    in_group = gid >= 0                         # (1, L) bool
    union = jnp.broadcast_to(in_group, x.shape)  # hoisted broadcast, reused 3x

    scaled = x * inv_tau                        # single full-width temperature scale

    # ---- exact per-group max: bidirectional masked roll tree (selection only) ----
    segmax = scaled
    for s in shifts:                            # static log2(max group width) steps
        for amt in (s, lane - s):               # both neighbor directions
            if amt % lane == 0:
                continue
            nbr = pltpu.roll(segmax, shift=amt, axis=1)
            nbr_gid = pltpu.roll(gid, shift=amt, axis=1)   # tracks the data movement,
            ok = in_group & (nbr_gid == gid)               # so the mask is always consistent
            segmax = jnp.maximum(segmax, jnp.where(ok, nbr, -jnp.inf))

    # ---- hard one-hot: first occurrence of the per-group max (exact) ----
    is_max = union & (scaled == segmax)
    is_max_f = is_max.astype(jnp.float32)
    # count of earlier same-group maxima; 0/1 operands -> exact on the MXU
    prefix = jnp.dot(is_max_f, lower_ref[...], preferred_element_type=jnp.float32)
    hard = (is_max & (prefix == 0.0)).astype(jnp.float32)

    # ---- one-pass softmax over all groups: ONE exp, MXU segment sums, ONE reciprocal ----
    e = jnp.where(union, jnp.exp(scaled - segmax), 0.0)        # in [0, 1]
    denom = jnp.dot(e, same_ref[...], preferred_element_type=jnp.float32)
    denom = jnp.where(union, denom, 1.0)
    soft = e * pl.reciprocal(denom, approx=True)               # EUP slot; error cancels below

    # straight-through numerics: forward value == hard (soft cancels up to 1 ulp)
    st = (hard - soft) + soft
    o_ref[...] = jnp.where(union, st, x)


def feature_hard_softmax(x, one_hot_index_map, tau=1.0, block_rows=None):
    """Pallas TPU implementation of FeatureHardSoftmax.forward.

    x: (B, F) float32 array.
    one_hot_index_map: dict feature_name -> list of contiguous column indices.
    """
    if not one_hot_index_map:
        return x
    B, F = x.shape
    x32 = x.astype(jnp.float32)

    # ---- contiguous (start, length) groups ----
    groups = []
    for name, idxs in one_hot_index_map.items():
        idxs = [int(i) for i in idxs]
        start, length = idxs[0], len(idxs)
        assert idxs == list(range(start, start + length)), (
            f"group {name!r} must be contiguous column indices")
        groups.append((start, length))

    # ---- lane-dense layout: pack R rows per 128-lane row (free reshape) ----
    if F % 128 == 0:
        R, Fp = 1, F
    elif F < 128:
        R, Fp = 128 // math.gcd(F, 128), F
    else:  # F > 128, not lane aligned: pad trailing passthrough columns
        R, Fp = 1, ((F + 127) // 128) * 128
    L = R * Fp
    if Fp != F:
        x32 = jnp.pad(x32, ((0, 0), (0, Fp - F)))

    # ---- batch tile over packed rows: ~512 KiB blocks, multiple of 8 rows ----
    bp0 = -(-B // R)
    if block_rows is None:
        tb = max(8, min(4096, (512 * 1024) // (L * 4)))
    else:
        tb = int(block_rows)
    tb = max(8, (min(tb, -(-bp0 // 8) * 8) // 8) * 8)
    bp = -(-bp0 // tb) * tb                    # packed rows, padded to a tile multiple
    b_pad = bp * R
    if b_pad != B:
        x32 = jnp.pad(x32, ((0, b_pad - B), (0, 0)))
    xp = x32.reshape(bp, L)                    # zero-cost when no padding was added

    # ---- static per-lane group metadata (group ids replicated per packed row) ----
    gid = np.full((L,), -1, np.int32)
    wmax = 1
    ngroups = len(groups)
    for r in range(R):
        for g, (s, w) in enumerate(groups):
            gid[r * Fp + s: r * Fp + s + w] = r * ngroups + g
            wmax = max(wmax, w)
    same = (gid[:, None] == gid[None, :]) & (gid[None, :] >= 0)
    lower = same & (np.arange(L)[:, None] < np.arange(L)[None, :])
    shifts = tuple(1 << k for k in range((wmax - 1).bit_length()))

    gid2 = jnp.asarray(gid.reshape(1, L))
    same_f = jnp.asarray(same.astype(np.float32))     # (L, L), L is modest for one-hot maps
    lower_f = jnp.asarray(lower.astype(np.float32))

    kernel = functools.partial(_feature_hard_softmax_kernel,
                               inv_tau=float(1.0 / tau), shifts=shifts, lane=L)

    out = pl.pallas_call(
        kernel,
        out_shape=jax.ShapeDtypeStruct((bp, L), jnp.float32),
        grid=(bp // tb,),
        in_specs=[
            pl.BlockSpec((tb, L), lambda i: (i, 0)),
            pl.BlockSpec((1, L), lambda i: (0, 0)),
            pl.BlockSpec((L, L), lambda i: (0, 0)),
            pl.BlockSpec((L, L), lambda i: (0, 0)),
        ],
        out_specs=pl.BlockSpec((tb, L), lambda i: (i, 0)),
        compiler_params=pltpu.CompilerParams(
            dimension_semantics=("parallel",)),
    )(xp, gid2, same_f, lower_f)

    out = out.reshape(b_pad, Fp)[:B, :F]
    return out.astype(x.dtype)


def _reference(x, one_hot_index_map, tau=1.0):
    """Pure-JAX reference (mirrors the PyTorch forward)."""
    x = jnp.asarray(x)
    for _, idxs in one_hot_index_map.items():
        idxs = jnp.asarray(idxs)
        logits = x[:, idxs] / tau
        soft = jax.nn.softmax(logits, axis=-1)
        hard = jax.nn.one_hot(jnp.argmax(soft, axis=-1), len(idxs), dtype=x.dtype)
        st = (hard - soft) + soft
        x = x.at[:, idxs].set(st)
    return x


if __name__ == "__main__":
    key = jax.random.PRNGKey(0)
    B, F = 256, 16
    x = jax.random.normal(key, (B, F), dtype=jnp.float32)

    # Two categorical (one-hot) feature groups; remaining columns are continuous
    # features that must pass through unchanged.
    one_hot_index_map = {
        "color": [4, 5, 6, 7],
        "shape": [10, 11, 12],
    }
    tau = 0.5

    # block_rows=8 forces a multi-step grid even at this small demo size so the
    # pipelined/tiled path (and the constant-operand respecification) is exercised.
    out = feature_hard_softmax(x, one_hot_index_map, tau=tau, block_rows=8)
    out = jax.block_until_ready(out)

    ref = _reference(x, one_hot_index_map, tau=tau)
    assert out.shape == x.shape and out.dtype == x.dtype
    assert jnp.allclose(out, ref, atol=1e-6, rtol=1e-6), "mismatch vs reference"

    print("KERNEL_OK")
</pallas_src>

<mosaic_0001>
module attributes {stable_mosaic.version = 11 : i64} {
  func.func @_feature_hard_softmax_kernel(%arg0: i32, %arg1: memref<8x128xf32, #tpu.memory_space<vmem>>, %arg2: memref<1x128xi32, #tpu.memory_space<vmem>>, %arg3: memref<128x128xf32, #tpu.memory_space<vmem>>, %arg4: memref<128x128xf32, #tpu.memory_space<vmem>>, %arg5: memref<8x128xf32, #tpu.memory_space<vmem>>) attributes {dimension_semantics = [#tpu.dimension_semantics<parallel>], iteration_bounds = array<i64: 4>, scalar_prefetch = 0 : i64, scratch_operands = 0 : i64, tpu.core_type = #tpu.core_type<tc>, window_params = [{transform_indices = @transform_0, window_bounds = array<i64: 8, 128>}, {pipeline_mode = #tpu.pipeline_mode<synchronous>, transform_indices = @transform_1, window_bounds = array<i64: 1, 128>}, {pipeline_mode = #tpu.pipeline_mode<synchronous>, transform_indices = @transform_2, window_bounds = array<i64: 128, 128>}, {pipeline_mode = #tpu.pipeline_mode<synchronous>, transform_indices = @transform_3, window_bounds = array<i64: 128, 128>}, {transform_indices = @transform_4, window_bounds = array<i64: 8, 128>}]} {
    %c0 = arith.constant 0 : index
    %c0_0 = arith.constant 0 : index
    %0 = vector.load %arg1[%c0, %c0_0] : memref<8x128xf32, #tpu.memory_space<vmem>>, vector<8x128xf32>
    %c0_1 = arith.constant 0 : index
    %c0_2 = arith.constant 0 : index
    %1 = vector.load %arg2[%c0_1, %c0_2] : memref<1x128xi32, #tpu.memory_space<vmem>>, vector<1x128xi32>
    %c0_i32 = arith.constant 0 : i32
    %2 = vector.broadcast %c0_i32 : i32 to vector<1x128xi32>
    %3 = arith.cmpi sge, %1, %2 : vector<1x128xi32>
    %4 = vector.shape_cast %3 : vector<1x128xi1> to vector<1x128xi1>
    %5 = vector.broadcast %4 : vector<1x128xi1> to vector<8x128xi1>
    %cst = arith.constant 2.000000e+00 : f32
    %6 = vector.broadcast %cst : f32 to vector<8x128xf32>
    %7 = arith.mulf %0, %6 : vector<8x128xf32>
    %c1_i32 = arith.constant 1 : i32
    %8 = tpu.dynamic_rotate %7 by %c1_i32 dim 1 : vector<8x128xf32>, i32 -> vector<8x128xf32>
    %c1_i32_3 = arith.constant 1 : i32
    %9 = tpu.dynamic_rotate %1 by %c1_i32_3 dim 1 : vector<1x128xi32>, i32 -> vector<1x128xi32>
    %10 = arith.cmpi eq, %9, %1 : vector<1x128xi32>
    %11 = arith.andi %3, %10 : vector<1x128xi1>
    %cst_4 = arith.constant 0xFF800000 : f32
    %12 = vector.shape_cast %11 : vector<1x128xi1> to vector<1x128xi1>
    %13 = vector.broadcast %12 : vector<1x128xi1> to vector<8x128xi1>
    %14 = vector.broadcast %cst_4 : f32 to vector<8x128xf32>
    %15 = arith.select %13, %8, %14 : vector<8x128xi1>, vector<8x128xf32>
    %16 = arith.maximumf %7, %15 : vector<8x128xf32>
    %c127_i32 = arith.constant 127 : i32
    %17 = tpu.dynamic_rotate %16 by %c127_i32 dim 1 : vector<8x128xf32>, i32 -> vector<8x128xf32>
    %c127_i32_5 = arith.constant 127 : i32
    %18 = tpu.dynamic_rotate %1 by %c127_i32_5 dim 1 : vector<1x128xi32>, i32 -> vector<1x128xi32>
    %19 = arith.cmpi eq, %18, %1 : vector<1x128xi32>
    %20 = arith.andi %3, %19 : vector<1x128xi1>
    %cst_6 = arith.constant 0xFF800000 : f32
    %21 = vector.shape_cast %20 : vector<1x128xi1> to vector<1x128xi1>
    %22 = vector.broadcast %21 : vector<1x128xi1> to vector<8x128xi1>
    %23 = vector.broadcast %cst_6 : f32 to vector<8x128xf32>
    %24 = arith.select %22, %17, %23 : vector<8x128xi1>, vector<8x128xf32>
    %25 = arith.maximumf %16, %24 : vector<8x128xf32>
    %c2_i32 = arith.constant 2 : i32
    %26 = tpu.dynamic_rotate %25 by %c2_i32 dim 1 : vector<8x128xf32>, i32 -> vector<8x128xf32>
    %c2_i32_7 = arith.constant 2 : i32
    %27 = tpu.dynamic_rotate %1 by %c2_i32_7 dim 1 : vector<1x128xi32>, i32 -> vector<1x128xi32>
    %28 = arith.cmpi eq, %27, %1 : vector<1x128xi32>
    %29 = arith.andi %3, %28 : vector<1x128xi1>
    %cst_8 = arith.constant 0xFF800000 : f32
    %30 = vector.shape_cast %29 : vector<1x128xi1> to vector<1x128xi1>
    %31 = vector.broadcast %30 : vector<1x128xi1> to vector<8x128xi1>
    %32 = vector.broadcast %cst_8 : f32 to vector<8x128xf32>
    %33 = arith.select %31, %26, %32 : vector<8x128xi1>, vector<8x128xf32>
    %34 = arith.maximumf %25, %33 : vector<8x128xf32>
    %c126_i32 = arith.constant 126 : i32
    %35 = tpu.dynamic_rotate %34 by %c126_i32 dim 1 : vector<8x128xf32>, i32 -> vector<8x128xf32>
    %c126_i32_9 = arith.constant 126 : i32
    %36 = tpu.dynamic_rotate %1 by %c126_i32_9 dim 1 : vector<1x128xi32>, i32 -> vector<1x128xi32>
    %37 = arith.cmpi eq, %36, %1 : vector<1x128xi32>
    %38 = arith.andi %3, %37 : vector<1x128xi1>
    %cst_10 = arith.constant 0xFF800000 : f32
    %39 = vector.shape_cast %38 : vector<1x128xi1> to vector<1x128xi1>
    %40 = vector.broadcast %39 : vector<1x128xi1> to vector<8x128xi1>
    %41 = vector.broadcast %cst_10 : f32 to vector<8x128xf32>
    %42 = arith.select %40, %35, %41 : vector<8x128xi1>, vector<8x128xf32>
    %43 = arith.maximumf %34, %42 : vector<8x128xf32>
    %44 = arith.cmpf oeq, %7, %43 : vector<8x128xf32>
    %45 = arith.andi %5, %44 : vector<8x128xi1>
    %46 = arith.extui %45 : vector<8x128xi1> to vector<8x128xi32>
    %47 = arith.sitofp %46 : vector<8x128xi32> to vector<8x128xf32>
    %c0_11 = arith.constant 0 : index
    %c0_12 = arith.constant 0 : index
    %48 = vector.load %arg4[%c0_11, %c0_12] : memref<128x128xf32, #tpu.memory_space<vmem>>, vector<128x128xf32>
    %cst_13 = arith.constant dense<0.000000e+00> : vector<8x128xf32>
    %49 = tpu.matmul %47, %48, %cst_13 {dimension_numbers = #tpu.dot_dimension_numbers<[1], [0], [0], [1], [0, 0, 1, 1], [], []>} : vector<8x128xf32>, vector<128x128xf32>, vector<8x128xf32> -> vector<8x128xf32>
    %cst_14 = arith.constant 0.000000e+00 : f32
    %50 = vector.broadcast %cst_14 : f32 to vector<8x128xf32>
    %51 = arith.cmpf oeq, %49, %50 : vector<8x128xf32>
    %52 = arith.andi %45, %51 : vector<8x128xi1>
    %53 = arith.extui %52 : vector<8x128xi1> to vector<8x128xi32>
    %54 = arith.sitofp %53 : vector<8x128xi32> to vector<8x128xf32>
    %55 = arith.subf %7, %43 : vector<8x128xf32>
    %56 = math.exp %55 : vector<8x128xf32>
    %cst_15 = arith.constant 0.000000e+00 : f32
    %57 = vector.broadcast %cst_15 : f32 to vector<8x128xf32>
    %58 = arith.select %5, %56, %57 : vector<8x128xi1>, vector<8x128xf32>
    %c0_16 = arith.constant 0 : index
    %c0_17 = arith.constant 0 : index
    %59 = vector.load %arg3[%c0_16, %c0_17] : memref<128x128xf32, #tpu.memory_space<vmem>>, vector<128x128xf32>
    %cst_18 = arith.constant dense<0.000000e+00> : vector<8x128xf32>
    %60 = tpu.matmul %58, %59, %cst_18 {dimension_numbers = #tpu.dot_dimension_numbers<[1], [0], [0], [1], [0, 0, 1, 1], [], []>} : vector<8x128xf32>, vector<128x128xf32>, vector<8x128xf32> -> vector<8x128xf32>
    %cst_19 = arith.constant 1.000000e+00 : f32
    %61 = vector.broadcast %cst_19 : f32 to vector<8x128xf32>
    %62 = arith.select %5, %60, %61 : vector<8x128xi1>, vector<8x128xf32>
    %63 = tpu.reciprocal %62 {approx = true} : vector<8x128xf32> -> vector<8x128xf32>
    %64 = arith.mulf %58, %63 : vector<8x128xf32>
    %65 = arith.subf %54, %64 : vector<8x128xf32>
    %66 = arith.addf %65, %64 : vector<8x128xf32>
    %67 = arith.select %5, %66, %0 : vector<8x128xi1>, vector<8x128xf32>
    %c0_20 = arith.constant 0 : index
    %c0_21 = arith.constant 0 : index
    %68 = vector.load %arg5[%c0_20, %c0_21] : memref<8x128xf32, #tpu.memory_space<vmem>>, vector<8x128xf32>
    tpu.vector_store %arg5[%c0_20, %c0_21], %67 {strides = array<i32>} : memref<8x128xf32, #tpu.memory_space<vmem>>, vector<8x128xf32>,
    return
  }
  func.func @transform_0(%arg0: i32) -> (i32, i32) {
    %c0_i32 = arith.constant 0 : i32
    %c0_i32_0 = arith.constant 0 : i32
    return %arg0, %c0_i32 : i32, i32
  }
  func.func @transform_1(%arg0: i32) -> (i32, i32) {
    %c0_i32 = arith.constant 0 : i32
    %c0_i32_0 = arith.constant 0 : i32
    %c0_i32_1 = arith.constant 0 : i32
    return %c0_i32, %c0_i32_0 : i32, i32
  }
  func.func @transform_2(%arg0: i32) -> (i32, i32) {
    %c0_i32 = arith.constant 0 : i32
    %c0_i32_0 = arith.constant 0 : i32
    %c0_i32_1 = arith.constant 0 : i32
    return %c0_i32, %c0_i32_0 : i32, i32
  }
  func.func @transform_3(%arg0: i32) -> (i32, i32) {
    %c0_i32 = arith.constant 0 : i32
    %c0_i32_0 = arith.constant 0 : i32
    %c0_i32_1 = arith.constant 0 : i32
    return %c0_i32, %c0_i32_0 : i32, i32
  }
  func.func @transform_4(%arg0: i32) -> (i32, i32) {
    %c0_i32 = arith.constant 0 : i32
    %c0_i32_0 = arith.constant 0 : i32
    return %arg0, %c0_i32 : i32, i32
  }
}

</mosaic_0001>

<bundles_post_ra>
// kernel: tpu_custom_call.1
= control target key start
LH: loop header
LB: loop body
LE: loop exit
PB: predicated region body
PF: predicated region fallthrough
CT: control target
= control target key end

     0   :  { %9 = vsyncpa [#allocation3], 0  ;;  %s1362_s0 = inlined_call_operand.hbm [shape: f32[32,128], index: 0, kind: input, shape index: {}]   ;;  %s1363_s1 = inlined_call_operand.vmem [shape: s32[1,128], index: 1, kind: input, shape index: {}]   ;;  %s1364_s2 = inlined_call_operand.hbm [shape: f32[128,128], index: 2, kind: input, shape index: {}]   ;;  %s1365_s3 = inlined_call_operand.hbm [shape: f32[128,128], index: 3, kind: input, shape index: {}]   ;;  %s1366_s4 = inlined_call_operand.hbm [shape: f32[32,128], index: 4, kind: output, shape index: {}]  }
   0x1   :  { %11 = vsyncpa [#allocation3 + $0x1], 0 }
   0x2   :  { %12 = vsyncpa [#allocation6], 0 }
   0x3   :  { %13 = vsyncpa [#allocation4], 0 }
   0x4   :  { %15 = vsyncpa [#allocation4 + $0x1], 0  ;;  %s1054_s15 = smov 0   ;;  %s1056_s16 = smov 0  }
   0x5   :  { %s1058_s17 = smov 0   ;;  %s1060_s18 = smov 0  }
   0x6 LB: > { %s1075_s19 = sadd.s32 4294967295, %s1012_s18   ;;  %s602_s20 = sadd.s32 4294967294, %s1012_s18   ;;  %s1012_s18 = sphi %s1060_s18, %s1387_s18   ;;  %s1008_s17 = sphi %s1058_s17, %s1386_s17   ;;  %s1004_s16 = sphi %s1056_s16, %s1385_s16   ;;  %s1000_s15 = sphi %s1054_s15, %s1384_s15  }
   0x7   : > { %p41_p0 = scmp.ne.s32.totalorder %s1004_s16, %s1000_s15  ;;  %p1367_p1 = scmp.eq.s32.totalorder %s1075_s19, 0 }
   0x8   : > { %p134_p3 = scmp.eq.s32.totalorder %s602_s20, 3  ;;  %p603_p5 = scmp.ge.s32.totalorder %s1012_s18, 1 }
   0x9   : > { %p1084_p4 = por %p1367_p1, %p41_p0  ;;  %p141_p7 = scmp.lt.s32.totalorder %s1012_s18, 5 }
   0xa   : > { %p1089_p6 = por %p134_p3, %p41_p0  ;;  %s1014_s24 = smov [#allocation5]  }
   0xb   : > { %s1370_s21 = scalar_select %p1084_p4, 1, 0 }
   0xc   : > { %s1371_s22 = scalar_select %p1089_p6, 1, 0 }
   0xd   : > { %p1094_p8 = pnand %p603_p5, %p141_p7  ;;  %s156_s25 = sshll.u32 %s1014_s24, 4  ;;  %s157_s25 = int_to_ptr.vmem [resolvable:$true] %s156_s25 }
   0xe   : > { %s1015_s27 = smov [#allocation7]   ;;  %s856_s5 = scalar_lea.hbm %s1364_s2, 2048 }
   0xf   : > { %s1372_s23 = scalar_select %p1094_p8, 1, 0 }
  0x10   : > { %p786_p9 = pneg %p1094_p8  ;;  %s169_s28 = sshll.u32 %s1015_s27, 4  ;;  %s1106_s28 = int_to_ptr.vmem [resolvable:$true] %s169_s28 }
  0x11   : > { %p857_p11 = scmp.ne.s32.totalorder %s1364_s2, %s856_s5  ;;  %p863_p3 = scmp.lt.u32.totalorder %s856_s5, %s1364_s2 }
  0x12   : > { %p1102_p10 = pnand %p786_p9, %p1367_p1 }
  0x14   : > { %p858_p12 = pneg %p1102_p10 }
  0x16   : > { %p859_p13 = pnand %p858_p12, %p857_p11 }
  0x18   : > { %p860_p0 = pneg %p859_p13 }
  0x1a   : > { %p865_p5 = pnand %p863_p3, %p860_p0 }
  0x1c   : > { %868 = shalt.err (!%p865_p5)
}
  0x1d   : > { %s869_s10 = scalar_lea.vmem %s157_s25, 2048  ;;  %p877_p2 = scmp.lt.s32.totalorder %s157_s25, %s157_s25 }
  0x1e   : > { %p870_p7 = scmp.ne.s32.totalorder %s157_s25, %s869_s10  ;;  %p878_p6 = scmp.lt.s32.totalorder %s869_s10, %s869_s10 }
  0x20   : > { %p872_p9 = pnand %p870_p7, %p858_p12  ;;  %p879_p4 = por %p878_p6, %p877_p2 }
  0x22   : > { %p873_p1 = pneg %p872_p9 }
  0x24   : > { %p880_p8 = pnand %p879_p4, %p873_p1 }
  0x26   : > { %883 = shalt.err (!%p880_p8)
}
  0x27   : > { %s1016_s11 = smov 128   ;;  %s1017_s12 = smov 8  }
  0x28   : > { %789 = dma.hbm_to_vmem [thread:$0]  (!%p1102_p10), %s1364_s2, 2048, %s157_s25, [#allocation6], %s1016_s11, %s1016_s11, %s1017_s12  }
  0x29   : > { %s884_s27 = scalar_lea.hbm %s1365_s3, 2048 }
  0x2a   : > { %p885_p11 = scmp.ne.s32.totalorder %s1365_s3, %s884_s27  ;;  %p891_p4 = scmp.lt.u32.totalorder %s884_s27, %s1365_s3 }
  0x2c   : > { %p887_p1 = pnand %p885_p11, %p858_p12 }
  0x2e   : > { %p888_p2 = pneg %p887_p1 }
  0x30   : > { %p893_p6 = pnand %p891_p4, %p888_p2 }
  0x32   : > { %896 = shalt.err (!%p893_p6)
}
  0x33   : > { %s897_s25 = scalar_lea.vmem %s1106_s28, 2048  ;;  %p905_p3 = scmp.lt.s32.totalorder %s1106_s28, %s1106_s28 }
  0x34   : > { %p898_p8 = scmp.ne.s32.totalorder %s1106_s28, %s897_s25  ;;  %p906_p5 = scmp.lt.s32.totalorder %s897_s25, %s897_s25 }
  0x36   : > { %p900_p13 = pnand %p898_p8, %p858_p12  ;;  %p907_p7 = por %p906_p5, %p905_p3 }
  0x38   : > { %p901_p0 = pneg %p900_p13 }
  0x3a   : > { %p908_p9 = pnand %p907_p7, %p901_p0 }
  0x3c   : > { %911 = shalt.err (!%p908_p9)
}
  0x3d   : > { %792 = dma.hbm_to_vmem [thread:$0]  (!%p1102_p10), %s1365_s3, 2048, %s1106_s28, [#allocation6], %s1016_s11, %s1016_s11, %s1017_s12  }
  0x3e   : > { %s1156_s9 = sadd.s32 1, %s1012_s18   ;;  %s28_s26 = sadd.s32 1, %s1008_s17 }
  0x3f   : > { %s25_s10 = ssub.s32 %s1012_s18, %s1156_s9  ;;  %p35_p12 = scmp.ne.s32.totalorder %s1008_s17, %s1004_s16 }
  0x40   : > { %p26_p11 = scmp.eq.s32.totalorder %s25_s10, 0  ;;  %p36_p1 = scmp.eq.s32.totalorder %s1012_s18, 0 }
  0x41   : > { %p1374_p2 = scmp.eq.s32.totalorder %s1075_s19, 3  ;;  %p803_p6 = scmp.lt.s32.totalorder %s1012_s18, 4 }
  0x42   : > { %s1172_s14 = scalar_select %p26_p11, %s1008_s17, %s28_s26  }
  0x43   : > { %p1166_p4 = por %p1374_p2, %p35_p12  ;;  %p37_p8 = por %p36_p1, %p35_p12 }
  0x44   : > { %s183_s20 = sand.u32 1, %s1008_s17   ;;  %s608_s28 = sshll.u32 %s1012_s18, 7 }
  0x45   : > { %s607_s24 = sshll.u32 %s183_s20, 3  ;;  %s1179_s27 = scalar_lea.hbm %s1362_s0, %s608_s28 }
  0x46   : > { %s187_s29 = scalar_lea.vmem [#allocation2], %s607_s24  ;;  %p1183_p10 = pnand %p803_p6, %p37_p8 }
  0x47   : > { %s194_s30 = sshll.u32 %s187_s29, 4  ;;  %s184_s6 = scalar_lea.sflag [#allocation3], %s183_s20  ;;  %s1181_s30 = int_to_ptr.vmem [resolvable:$true] %s194_s30 }
  0x48   : > { %s912_s25 = scalar_lea.hbm %s1179_s27, 128  ;;  %p914_p0 = pneg %p1183_p10 }
  0x49   : > { %p913_p13 = scmp.ne.s32.totalorder %s1179_s27, %s912_s25  ;;  %s917_s26 = scalar_lea.hbm %s1362_s0, 512 }
  0x4a   : > { %p918_p7 = scmp.lt.u32.totalorder %s1179_s27, %s1362_s0  ;;  %p919_p9 = scmp.lt.u32.totalorder %s917_s26, %s912_s25 }
  0x4b   : > { %p915_p3 = pnand %p914_p0, %p913_p13  ;;  %p921_p11 = scmp.lt.u32.totalorder %s912_s25, %s1179_s27 }
  0x4c   : > { %p920_p12 = por %p919_p9, %p918_p7 }
  0x4d   : > { %p916_p5 = pneg %p915_p3 }
  0x4e   : > { %p922_p1 = por %p921_p11, %p920_p12 }
  0x50   : > { %p923_p2 = pnand %p922_p1, %p916_p5 }
  0x52   : > { %926 = shalt.err (!%p923_p2)
}
  0x53   : > { %s927_s20 = scalar_lea.vmem %s1181_s30, 128  ;;  %s1018_s28 = smov [#allocation2]  }
  0x54   : > { %p928_p6 = scmp.ne.s32.totalorder %s1181_s30, %s927_s20  ;;  %s932_s11 = sshll.u32 %s1018_s28, 4  ;;  %s933_s11 = int_to_ptr.vmem [resolvable:$false] %s932_s11 }
  0x55   : > { %s934_s12 = scalar_lea.vmem %s933_s11, 256  ;;  %p935_p3 = scmp.lt.s32.totalorder %s1181_s30, %s933_s11 }
  0x56   : > { %p930_p8 = pnand %p928_p6, %p914_p0  ;;  %p936_p7 = scmp.lt.s32.totalorder %s934_s12, %s927_s20 }
  0x58   : > { %p931_p13 = pneg %p930_p8  ;;  %p937_p9 = por %p936_p7, %p935_p3 }
  0x5a   : > { %p938_p12 = pnand %p937_p9, %p931_p13 }
  0x5c   : > { %941 = shalt.err (!%p938_p12)
}
  0x5d   : > { %796 = dma.hbm_to_vmem [thread:$0]  (!%p1183_p10), %s1179_s27, 128, %s1181_s30, %s184_s6  }
  0x5e   : > { %p1377_p5 = scmp.ne.s32.totalorder %s1372_s23, 0 }
  0x5f   : > { %s1215_s29 = sand.u32 (!%p1377_p5), 1, %s1004_s16   ;;  %p1378_p0 = scmp.ne.s32.totalorder (!%p1377_p5), %s1370_s21, 0 }
  0x60   : > { %203 = sbr.rel (%p1377_p5) target bundleno = 846 (0x34e), region = 36  ;;  %s610_s25 = sshll.u32 (!%p1377_p5), %s1215_s29, 3 }
  0x61   : > { %s206_s7 = scalar_lea.sflag (!%p1377_p5), [#allocation3], %s1215_s29  ;;  %s209_s8 = scalar_lea.vmem (!%p1377_p5), [#allocation2], %s610_s25 }
  0x67   : > { %987 = dma.done.wait (%p1378_p0), %s206_s7, 128  }
  0x68   : > { %989 = vsyncadd (%p1378_p0), %s206_s7, 4294967168  ;;  %p1379_p10 = scmp.eq.s32.totalorder %s1075_s19, 0 }
  0x6a   : > { %991 = dma.done.wait (%p1379_p10), [#allocation6], 4096   ;;  %p1380_p11 = pmov %p1379_p10 }
  0x6b   : > { %v1232_v0 = vld [vmem:[%s1363_s1] sm:$0x1]  ;;  %s1019_s30 = smov 1   ;;  %s1020_s21 = smov 127   ;;  %v246_v3 = vlaneseq  ;;  %v1023_v7 = vmov 0   ;;  %v312_v16 = vld [vmem:[#allocation7] sm:$0xff] }
  0x6c   : > { %993 = vsyncadd (%p1380_p11), [#allocation6], 4294963200  ;;  %v1234_v1 = vld [vmem:[%s209_s8] sm:$0xff]  ;;  %254 = vrot.lane.b32.xlu0 %v1232_v0, %s1019_s30  ;;  %268 = vrot.lane.b32.xlu1 %v1232_v0, %s1020_s21  ;;  %s1021_s5 = smov 2   ;;  %vm244_vm0 = vcmp.ge.s32.totalorder %v1232_v0, 0  ;;  %s1022_s6 = smov 126  }
  0x6d   : > { %v1238_v2 = vmul.f32 2.0, %v1234_v1  ;;  %v247_v4 = vshrl.u32 %v246_v3, 7  ;;  %v313_v17 = vld [vmem:[#allocation7 + $0x8] sm:$0xff]  ;;  %v314_v18 = vld [vmem:[#allocation7 + $0x10] sm:$0xff]  ;;  %v1024_v19 = vmov 0.0|0.0   ;;  %v315_v21 = vld [vmem:[#allocation7 + $0x18] sm:$0xff] }
  0x6e   : > { %726 = vmatprep.subr.bf16.mxu0 %v1024_v19  ;;  %v727_v20 = vpack.c.bf16 %v313_v17, %v312_v16  ;;  %750 = vmatprep.subr.bf16.mxu1 %v1024_v19  ;;  %v406_v22 = vld [vmem:[#allocation5] sm:$0xff]  ;;  %v730_v23 = vpack.c.bf16 %v315_v21, %v314_v18  ;;  %v407_v25 = vld [vmem:[#allocation5 + $0x8] sm:$0xff]  ;;  %v408_v28 = vld [vmem:[#allocation5 + $0x10] sm:$0xff]  ;;  %vm1025_vm9 = vmmov 0   ;;  %v1026_v62 = vmov 0.0   ;;  %s619_s26 = sshll.u32 %s1075_s19, 7 }
  0x6f   : > { %v1245_v6 = vsub.s32 0, %v247_v4  ;;  %v316_v24 = vld [vmem:[#allocation7 + $0x20] sm:$0xff]  ;;  %v317_v26 = vld [vmem:[#allocation7 + $0x28] sm:$0xff]  ;;  %v751_v27 = vpack.c.bf16 %v407_v25, %v406_v22  ;;  %v409_v29 = vld [vmem:[#allocation5 + $0x18] sm:$0xff]  ;;  %688 = vmatprep.mubr.msk.f32.mxu0 %vm1025_vm9, %v1026_v62  ;;  %723 = vmatprep.mubr.msk.f32.mxu1 %vm1025_vm9, %v1026_v62  ;;  %s241_s10 = scalar_lea.vmem [#allocation8], %s610_s25  ;;  %s1316_s11 = scalar_lea.hbm %s1366_s4, %s619_s26 }
  0x70   : > { %252 = vrot.lane.b32.xlu0 %v1238_v2, %s1019_s30  ;;  %728 = vmatpush3.bf16.msra.mxu0 %v727_v20  ;;  %v754_v31 = vpack.c.bf16 %v409_v29, %v408_v28  ;;  %v733_v33 = vpack.c.bf16 %v317_v26, %v316_v24  ;;  %v410_v34 = vld [vmem:[#allocation5 + $0x20] sm:$0xff]  ;;  %v411_v35 = vld [vmem:[#allocation5 + $0x28] sm:$0xff]  ;;  %v318_v37 = vld [vmem:[#allocation7 + $0x30] sm:$0xff]  ;;  %v245_v20 = vsel %vm244_vm0, 1, %v1023_v7  ;;  %s513_s24 = sshll.u32 %s241_s10, 4  ;;  %s500_s19 = scalar_lea.sflag [#allocation4], %s1215_s29  ;;  %s1318_s24 = int_to_ptr.vmem [resolvable:$true] %s513_s24 }
  0x71   : > { %729 = vmatprep.subr.bf16.mxu0 %v1024_v19  ;;  %752 = vmatpush3.bf16.msra.mxu1 %v751_v27  ;;  %v319_v38 = vld [vmem:[#allocation7 + $0x38] sm:$0xff]  ;;  %v757_v39 = vpack.c.bf16 %v411_v35, %v410_v34  ;;  %v412_v41 = vld [vmem:[#allocation5 + $0x30] sm:$0xff]  ;;  %v320_v43 = vld [vmem:[#allocation7 + $0x40] sm:$0xff]  ;;  %s942_s12 = scalar_lea.vmem %s1318_s24, 128  ;;  %s1028_s25 = smov [#allocation8]  }
  0x72   : > { %753 = vmatprep.subr.bf16.mxu1 %v1024_v19  ;;  %v736_v40 = vpack.c.bf16 %v319_v38, %v318_v37  ;;  %v413_v42 = vld [vmem:[#allocation5 + $0x38] sm:$0xff]  ;;  %v321_v44 = vld [vmem:[#allocation7 + $0x48] sm:$0xff]  ;;  %v322_v47 = vld [vmem:[#allocation7 + $0x50] sm:$0xff]  ;;  %p943_p1 = scmp.ne.s32.totalorder %s1318_s24, %s942_s12  ;;  %s946_s7 = sshll.u32 %s1028_s25, 4  ;;  %s947_s7 = int_to_ptr.vmem [resolvable:$false] %s946_s7 }
  0x73   : > { %v760_v45 = vpack.c.bf16 %v413_v42, %v412_v41  ;;  %v739_v46 = vpack.c.bf16 %v321_v44, %v320_v43  ;;  %v323_v48 = vld [vmem:[#allocation7 + $0x58] sm:$0xff]  ;;  %v324_v50 = vld [vmem:[#allocation7 + $0x60] sm:$0xff]  ;;  %v325_v51 = vld [vmem:[#allocation7 + $0x68] sm:$0xff]  ;;  %s948_s8 = scalar_lea.vmem %s947_s7, 256  ;;  %p949_p8 = scmp.lt.s32.totalorder %s1318_s24, %s947_s7 }
  0x74   : > { %282 = vrot.lane.b32.xlu0 %v1232_v0, %s1021_s5  ;;  %731 = vmatpush3.bf16.msra.mxu0 %v730_v23  ;;  %v742_v49 = vpack.c.bf16 %v323_v48, %v322_v47  ;;  %v745_v52 = vpack.c.bf16 %v325_v51, %v324_v50  ;;  %v326_v54 = vld [vmem:[#allocation7 + $0x70] sm:$0xff]  ;;  %v327_v55 = vld [vmem:[#allocation7 + $0x78] sm:$0xff]  ;;  %v414_v58 = vld [vmem:[#allocation5 + $0x40] sm:$0xff]  ;;  %p944_p2 = pnand %p943_p1, %p1166_p4  ;;  %p950_p13 = scmp.lt.s32.totalorder %s948_s8, %s942_s12 }
  0x75   : > { %732 = vmatprep.subr.bf16.mxu0 %v1024_v19  ;;  %755 = vmatpush3.bf16.msra.mxu1 %v754_v31  ;;  %v748_v57 = vpack.c.bf16 %v327_v55, %v326_v54  ;;  %v415_v59 = vld [vmem:[#allocation5 + $0x48] sm:$0xff]  ;;  %v416_v63 = vld [vmem:[#allocation5 + $0x50] sm:$0xff]  ;;  %v417_v3 = vld [vmem:[#allocation5 + $0x58] sm:$0xff] }
  0x76   : > { %756 = vmatprep.subr.bf16.mxu1 %v1024_v19  ;;  %v763_v60 = vpack.c.bf16 %v415_v59, %v414_v58  ;;  %v766_v4 = vpack.c.bf16 %v417_v3, %v416_v63  ;;  %p945_p6 = pneg %p944_p2  ;;  %p951_p3 = por %p950_p13, %p949_p8 }
  0x78   : > { %296 = vrot.lane.b32.xlu0 %v1232_v0, %s1022_s6  ;;  %734 = vmatpush3.bf16.msra.mxu0 %v733_v33  ;;  %p952_p7 = pnand %p951_p3, %p945_p6 }
  0x79   : > { %735 = vmatprep.subr.bf16.mxu0 %v1024_v19  ;;  %758 = vmatpush3.bf16.msra.mxu1 %v757_v39 }
  0x7a   : > { %759 = vmatprep.subr.bf16.mxu1 %v1024_v19 }
  0x7c   : > { %737 = vmatpush3.bf16.msra.mxu0 %v736_v40 }
  0x7d   : > { %738 = vmatprep.subr.bf16.mxu0 %v1024_v19  ;;  %761 = vmatpush3.bf16.msra.mxu1 %v760_v45 }
  0x7e   : > { %762 = vmatprep.subr.bf16.mxu1 %v1024_v19 }
  0x80   : > { %740 = vmatpush3.bf16.msra.mxu0 %v739_v46 }
  0x81   : > { %741 = vmatprep.subr.bf16.mxu0 %v1024_v19  ;;  %764 = vmatpush3.bf16.msra.mxu1 %v763_v60 }
  0x82   : > { %765 = vmatprep.subr.bf16.mxu1 %v1024_v19 }
  0x84   : > { %743 = vmatpush3.bf16.msra.mxu0 %v742_v49 }
  0x85   : > { %744 = vmatprep.subr.bf16.mxu0 %v1024_v19  ;;  %767 = vmatpush3.bf16.msra.mxu1 %v766_v4 }
  0x86   : > { %768 = vmatprep.subr.bf16.mxu1 %v1024_v19 }
  0x88   : > { %746 = vmatpush3.bf16.msra.mxu0 %v745_v52 }
  0x89   : > { %747 = vmatprep.subr.bf16.mxu0 %v1024_v19 }
  0x8c   : > { %749 = vmatpush3.bf16.msra.mxu0 %v748_v57 }
  0xde   : > { %v255_v5 = vpop.permute.xlu0 %254  ;;  %v269_v13 = vpop.permute.xlu1 %268 }
  0xdf   : > { %vm256_vm1 = vcmp.eq.s32.totalorder %v255_v5, %v1232_v0  ;;  %vm270_vm4 = vcmp.eq.s32.totalorder %v269_v13, %v1232_v0  ;;  %v418_v5 = vld [vmem:[#allocation5 + $0x60] sm:$0xff] }
  0xe0   : > { %vm257_vm2 = vmand %vm244_vm0, %vm256_vm1 }
  0xe1   : > { %v258_v8 = vsel %vm257_vm2, 1, %v1023_v7  ;;  %vm271_vm5 = vmand %vm244_vm0, %vm270_vm4 }
  0xe2   : > { %v262_v9 = vrot.slane %v258_v8, %v1245_v6  ;;  %v253_v10 = vpop.permute.xlu0 %252  ;;  %v272_v14 = vsel %vm271_vm5, 1, %v1023_v7  ;;  %v419_v8 = vld [vmem:[#allocation5 + $0x68] sm:$0xff] }
  0xe3   : > { %v276_v15 = vrot.slane %v272_v14, %v1245_v6 }
  0xe4   : > { %vm263_vm3 = vcmp.eq.s32.totalorder %v262_v9, 1  ;;  %v769_v9 = vpack.c.bf16 %v419_v8, %v418_v5 }
  0xe5   : > { %v264_v11 = vsel %vm263_vm3, %v253_v10, -inf  ;;  %vm277_vm6 = vcmp.eq.s32.totalorder %v276_v15, 1  ;;  %v420_v10 = vld [vmem:[#allocation5 + $0x70] sm:$0xff] }
  0xe6   : > { %v265_v12 = vmax.f32 %v1238_v2, %v264_v11  ;;  %v283_v53 = vpop.permute.xlu0 %282  ;;  %v421_v11 = vld [vmem:[#allocation5 + $0x78] sm:$0xff]  ;;  %770 = vmatpush3.bf16.msra.mxu1 %v769_v9 }
  0xe7   : > { %vm284_vm7 = vcmp.eq.s32.totalorder %v283_v53, %v1232_v0  ;;  %v772_v15 = vpack.c.bf16 %v421_v11, %v420_v10  ;;  %771 = vmatprep.subr.bf16.mxu1 %v1024_v19  ;;  %v249_v19 = vrot.slane %v245_v20, %v1245_v6 }
  0xe8   : > { %266 = vrot.lane.b32.xlu1 %v265_v12, %s1020_s21  ;;  %vm285_vm8 = vmand %vm244_vm0, %vm284_vm7 }
  0xe9   : > { %v286_v56 = vsel %vm285_vm8, 1, %v1023_v7  ;;  %vm1296_vm14 = vcmp.eq.s32.totalorder %v249_v19, 1 }
  0xea   : > { %v290_v61 = vrot.slane %v286_v56, %v1245_v6  ;;  %773 = vmatpush3.bf16.msra.mxu1 %v772_v15  ;;  %v297_v16 = vpop.permute.xlu0 %296 }
  0xeb   : > { %vm298_vm11 = vcmp.eq.s32.totalorder %v297_v16, %v1232_v0  ;;  %v1027_v0 = vmov 1.0  }
  0xec   : > { %vm291_vm10 = vcmp.eq.s32.totalorder %v290_v61, 1  ;;  %vm299_vm12 = vmand %vm244_vm0, %vm298_vm11 }
  0xed   : > { %v300_v17 = vsel %vm299_vm12, 1, %v1023_v7 }
  0xee   : > { %v304_v18 = vrot.slane %v300_v17, %v1245_v6 }
  0xf0   : > { %vm305_vm13 = vcmp.eq.s32.totalorder %v304_v18, 1 }
 0x15a   : > { %v267_v30 = vpop.permute.xlu1 %266 }
 0x15b   : > { %v278_v32 = vsel %vm277_vm6, %v267_v30, -inf }
 0x15c   : > { %v1264_v36 = vmax.f32 %v265_v12, %v278_v32 }
 0x15e   : > { %280 = vrot.lane.b32.xlu1 %v1264_v36, %s1021_s5 }
 0x1d0   : > { %v281_v12 = vpop.permute.xlu1 %280 }
 0x1d1   : > { %v292_v13 = vsel %vm291_vm10, %v281_v12, -inf }
 0x1d2   : > { %v293_v14 = vmax.f32 %v1264_v36, %v292_v13 }
 0x1d4   : > { %294 = vrot.lane.b32.xlu1 %v293_v14, %s1022_s6 }
 0x246   : > { %v295_v21 = vpop.permute.xlu1 %294 }
 0x247   : > { %v306_v22 = vsel %vm305_vm13, %v295_v21, -inf }
 0x248   : > { %v307_v23 = vmax.f32 %v293_v14, %v306_v22 }
 0x24a   : > { %vm308_vm15 = vcmp.eq.f32.partialorder %v1238_v2, %v307_v23  ;;  %v402_v25 = vsub.f32 %v1238_v2, %v307_v23 }
 0x24b   : > { %vm309_vm1 = vmand %vm1296_vm14, %vm308_vm15 }
 0x24c   : > { %v403_v26 = vmul.f32 1.442695, %v402_v25  ;;  %689 = vmatmul.mubr.msk.f32.vlgmr.msra.gmra.mrb[0].mxu0 %vm309_vm1, %v1027_v0 }
 0x24e   : > { %852 = vpow2.f32 %v403_v26 }
 0x258   : > { %v853_v6 = vpop.eup %852 }
 0x259   : > { %724 = vmatmul.mubr.msk.f32.vlgmr.msra.gmra.mrb[0].mxu1 %vm1296_vm14, %v853_v6  ;;  %v405_v31 = vsel %vm1296_vm14, %v853_v6, 0.0 }
 0x31f   : > { %v394_v7 = vpop.f32.mrb[0].mxu0 }
 0x320   : > { %v690_v27 = vpop.f32.mrb[1].mxu0  ;;  %vm398_vm0 = vcmp.eq.f32.partialorder %v394_v7, 0.0 }
 0x321   : > { %vm399_vm2 = vmand %vm309_vm1, %vm398_vm0 }
 0x322   : > { %v616_v33 = vsel %vm399_vm2, 1.0, %v1026_v62 }
 0x32c   : > { %v488_v28 = vpop.f32.mrb[0].mxu1 }
 0x32d   : > { %v492_v29 = vsel %vm1296_vm14, %v488_v28, 1.0  ;;  %v725_v2 = vpop.f32.mrb[1].mxu1 }
 0x32e   : > { %854 = vrcp.f32 %v492_v29 }
 0x338   : > { %v855_v30 = vpop.eup %854 }
 0x339   : > { %v494_v32 = vmul.f32 %v855_v30, %v405_v31 }
 0x33b   : > { %v495_v34 = vsub.f32 %v616_v33, %v494_v32 }
 0x33d   : > { %v496_v35 = vadd.f32 %v495_v34, %v494_v32 }
 0x33f   : > { %v497_v36 = vsel %vm1296_vm14, %v496_v35, %v1234_v1 }
 0x340   : > { %498 = vst [vmem:[%s241_s10] sm:$0xff] %v497_v36 }
 0x341   : > { %955 = shalt.err (!%p952_p7)
}
 0x342   : > { %s956_s29 = scalar_lea.hbm %s1316_s11, 128  ;;  %s960_s30 = scalar_lea.hbm %s1366_s4, 512 }
 0x343   : > { %p957_p9 = scmp.ne.s32.totalorder %s1316_s11, %s956_s29  ;;  %p961_p0 = scmp.lt.u32.totalorder %s1316_s11, %s1366_s4 }
 0x344   : > { %p962_p10 = scmp.lt.u32.totalorder %s960_s30, %s956_s29  ;;  %p964_p1 = scmp.lt.u32.totalorder %s956_s29, %s1316_s11 }
 0x345   : > { %p958_p12 = pnand %p957_p9, %p1166_p4 }
 0x346   : > { %p963_p11 = por %p962_p10, %p961_p0 }
 0x347   : > { %p959_p5 = pneg %p958_p12 }
 0x348   : > { %p965_p2 = por %p964_p1, %p963_p11 }
 0x34a   : > { %p966_p6 = pnand %p965_p2, %p959_p5 }
 0x34c   : > { %969 = shalt.err (!%p966_p6)
}
 0x34d   : > { %784 = dma.vmem_to_hbm [thread:$0]  (%p1166_p4), %s1318_s24, 128, %s1316_s11, %s500_s19  }
 0x34e PF: > { %p806_p8 = scmp.ge.s32.totalorder %s1012_s18, 2  ;;  %s525_s6 = sand.u32 1, %s1000_s15  }
 0x34f   : > { %p1383_p13 = scmp.ne.s32.totalorder %s1371_s22, 0  ;;  %s526_s26 = scalar_lea.sflag [#allocation4], %s525_s6 }
 0x351   : > { %p798_p3 = pnand %p806_p8, %p1383_p13 }
 0x353   : > { %995 = dma.done.wait (!%p798_p3), %s526_s26, 128  }
 0x354   : > { %997 = vsyncadd (!%p798_p3), %s526_s26, 4294967168  ;;  %p18_p7 = scmp.ge.s32.totalorder %s1156_s9, 6   ;;  %s1384_s15 = smov %s1004_s16 }
 0x355   : > { %s1385_s16 = smov %s1008_s17  ;;  %s1386_s17 = smov %s1172_s14 }
 0x356   : > { %s1387_s18 = smov %s1156_s9  ;;  %20 = sbr.rel (!%p18_p7) target bundleno = 6 (0x6), region = 89 }
 0x35d   :  { %531 = vsyncpa [#allocation3], 1 }
 0x35e   :  { %533 = vsyncpa [#allocation3 + $0x1], 1 }
 0x35f   :  { %534 = vsyncpa [#allocation6], 1 }
 0x360   :  { %535 = vsyncpa [#allocation4], 1 }
 0x361   :  { %537 = vsyncpa [#allocation4 + $0x1], 1 }

</bundles_post_ra>
